<compile_context>
chip_gen: v6e
topology: v6e:2x2x1
jax: 0.10.0
libtpu: 0.0.40
codegen_flags: <defaults>
</compile_context>

<pallas_src>
import jax
import jax.numpy as jnp
from jax.experimental import pallas as pl
from jax.experimental.pallas import tpu as pltpu

BATCH, SEQ, FEAT, HID = 2, 8, 2, 32


# ----------------------------------------------------------------------------
# Kernel 1: actor — one batch per grid step.
#   emb   = x @ w              (single small 2-D MXU matmul)
#   score = x @ (w @ v)        (VPU FMAs against precomputed wv; no N=1 matmul)
#   probs = softmax(score)     (EUP exp + approx reciprocal)
# ----------------------------------------------------------------------------
def _actor_kernel(x_ref, w_ref, wv_ref, emb_ref, probs_ref):
    x = x_ref[...]                                     # (S, F) this batch's cities
    w = w_ref[...]                                     # (F, H)
    feat = x.shape[1]

    # Per-city embedding: one 2-D MXU matmul (no batched dot_general).
    emb = jnp.dot(x, w, preferred_element_type=jnp.float32)       # (S, H)
    emb_ref[...] = emb

    # Scalar score per city, unrolled over F on the VPU (F is tiny).
    scores = x[:, 0:1] * wv_ref[0:1, :]                            # (S, 1)
    for f in range(1, feat):
        scores = scores + x[:, f:f + 1] * wv_ref[f:f + 1, :]

    # Softmax over the sequence (sublane axis); divide -> EUP reciprocal.
    m = jnp.max(scores, axis=0, keepdims=True)                     # (1, 1)
    e = jnp.exp(scores - m)                                        # (S, 1)
    denom = jnp.sum(e, axis=0, keepdims=True)                      # (1, 1)
    probs_ref[...] = e * pl.reciprocal(denom, approx=True)         # (S, 1)


def actor_pallas(x2d, w, wv, batch, seq, feat, hid):
    emb2d, probs_col = pl.pallas_call(
        _actor_kernel,
        grid=(batch,),
        in_specs=[
            pl.BlockSpec((seq, feat), lambda b: (b, 0)),   # row-block of flattened x
            pl.BlockSpec((feat, hid), lambda b: (0, 0)),   # shared weights
            pl.BlockSpec((feat, 1), lambda b: (0, 0)),     # precomputed w @ v
        ],
        out_specs=(
            pl.BlockSpec((seq, hid), lambda b: (b, 0)),
            pl.BlockSpec((seq, 1), lambda b: (b, 0)),
        ),
        out_shape=(
            jax.ShapeDtypeStruct((batch * seq, hid), jnp.float32),
            jax.ShapeDtypeStruct((batch * seq, 1), jnp.float32),
        ),
        compiler_params=pltpu.CompilerParams(
            dimension_semantics=("parallel",)),            # v7x: one batch per TC
        cost_estimate=pl.CostEstimate(
            flops=2 * batch * seq * feat * hid + 6 * batch * seq,
            transcendentals=batch * seq + batch,
            bytes_accessed=4 * (x2d.size + w.size + wv.size
                                + batch * seq * hid + batch * seq)),
    )(x2d, w, wv)
    return emb2d, probs_col


# ----------------------------------------------------------------------------
# Kernel 2: fused gather + cyclic TSP tour length — one batch per grid step.
# Actions arrive via scalar prefetch (SMEM); cities are gathered with dynamic
# sublane slices; distances use per-feature VPU math (no cross-lane reduce).
# ----------------------------------------------------------------------------
def _tour_reward_kernel(actions_ref, x_ref, r_ref):
    # actions_ref: (B, S) int32 in SMEM (scalar prefetch)
    # x_ref:       (S, F) VMEM block — this batch's cities
    # r_ref:       (1, 1, 1) VMEM block — this batch's tour length
    b = pl.program_id(0)
    seq, feat = x_ref.shape

    def city(s):
        # Gather one city by its action index: dynamic sublane slice.
        return x_ref[pl.ds(actions_ref[b, s], 1), :]               # (1, F)

    def seg_len(p, c):
        d = p - c                                                  # (1, F)
        sq = d[:, 0:1] * d[:, 0:1]
        for f in range(1, feat):                                   # F=2: dx^2+dy^2
            sq = sq + d[:, f:f + 1] * d[:, f:f + 1]
        return jnp.sqrt(sq)                                        # (1, 1)

    first = city(0)
    prev = first
    total = jnp.zeros((1, 1), jnp.float32)
    for s in range(1, seq):                                        # static unroll, S=8
        cur = city(s)
        total = total + seg_len(prev, cur)
        prev = cur
    total = total + seg_len(prev, first)                           # close the cycle
    r_ref[0] = total


def tour_reward_pallas(actions, x2d, batch, seq, feat):
    r = pl.pallas_call(
        _tour_reward_kernel,
        grid_spec=pltpu.PrefetchScalarGridSpec(
            num_scalar_prefetch=1,
            grid=(batch,),
            in_specs=[pl.BlockSpec((seq, feat), lambda b, acts: (b, 0))],
            out_specs=pl.BlockSpec((1, 1, 1), lambda b, acts: (b, 0, 0)),
        ),
        out_shape=jax.ShapeDtypeStruct((batch, 1, 1), jnp.float32),
        compiler_params=pltpu.CompilerParams(
            dimension_semantics=("parallel",)),
        cost_estimate=pl.CostEstimate(
            flops=batch * seq * (3 * feat + 2),
            transcendentals=batch * seq,
            bytes_accessed=4 * (actions.size + x2d.size + batch)),
    )(actions, x2d)
    return r[:, 0, 0]                                              # (B,)


# ----------------------------------------------------------------------------
# Forward: (R, probs, actions, embeddings)
# ----------------------------------------------------------------------------
@jax.jit
def solver_tsne_forward(inputs, w_embed, v_score):
    # TODO(synk): `self.actor` / `get_solution_reward` are undefined in the
    # reference module; a minimal deterministic actor and the standard cyclic
    # TSP tour-length reward are used in their place.
    batch, seq, feat = inputs.shape
    hid = w_embed.shape[1]

    # Wrapper-side layout plumbing (free / tiny): flatten for the 2-D MXU
    # matmul and fold the N=1 score matmul into wv = w @ v.
    x2d = inputs.reshape(batch * seq, feat)
    wv = w_embed @ v_score                                          # (F, 1)

    emb2d, probs_col = actor_pallas(x2d, w_embed, wv, batch, seq, feat, hid)
    embeddings = emb2d.reshape(batch, seq, hid)
    probs = probs_col.reshape(batch, seq)

    # Greedy decoding: permutation of cities by selection probability.
    # (argsort has no clean in-kernel Pallas equivalent; stays in XLA.)
    actions = jnp.argsort(-probs, axis=-1).astype(jnp.int32)        # (B, S)

    # Fused gather + reward: no materialized tour, no wrapper roll/gather.
    R = tour_reward_pallas(actions, x2d, batch, seq, feat)           # (B,)
    return R, probs, actions, embeddings


if __name__ == "__main__":
    key = jax.random.PRNGKey(0)
    k_in, k_w, k_v = jax.random.split(key, 3)

    inputs = jax.random.uniform(k_in, (BATCH, SEQ, FEAT), dtype=jnp.float32)
    w_embed = 0.1 * jax.random.normal(k_w, (FEAT, HID), dtype=jnp.float32)
    v_score = 0.1 * jax.random.normal(k_v, (HID, 1), dtype=jnp.float32)

    R, probs, actions, embeddings = solver_tsne_forward(inputs, w_embed, v_score)
    jax.block_until_ready((R, probs, actions, embeddings))

    assert R.shape == (BATCH,)
    assert probs.shape == (BATCH, SEQ)
    assert actions.shape == (BATCH, SEQ)
    assert embeddings.shape == (BATCH, SEQ, HID)

    print("KERNEL_OK")
</pallas_src>

<mosaic_0001>
module attributes {stable_mosaic.version = 11 : i64} {
  func.func @_actor_kernel(%arg0: i32, %arg1: memref<8x2xf32, #tpu.memory_space<vmem>>, %arg2: memref<2x32xf32, #tpu.memory_space<vmem>>, %arg3: memref<2x1xf32, #tpu.memory_space<vmem>>, %arg4: memref<8x32xf32, #tpu.memory_space<vmem>>, %arg5: memref<8x1xf32, #tpu.memory_space<vmem>>) attributes {dimension_semantics = [#tpu.dimension_semantics<parallel>], iteration_bounds = array<i64: 2>, scalar_prefetch = 0 : i64, scratch_operands = 0 : i64, tpu.core_type = #tpu.core_type<tc>, window_params = [{transform_indices = @transform_0, window_bounds = array<i64: 8, 2>}, {pipeline_mode = #tpu.pipeline_mode<synchronous>, transform_indices = @transform_1, window_bounds = array<i64: 2, 32>}, {pipeline_mode = #tpu.pipeline_mode<synchronous>, transform_indices = @transform_2, window_bounds = array<i64: 2, 1>}, {transform_indices = @transform_3, window_bounds = array<i64: 8, 32>}, {transform_indices = @transform_4, window_bounds = array<i64: 8, 1>}]} {
    %c0 = arith.constant 0 : index
    %c0_0 = arith.constant 0 : index
    %0 = vector.load %arg1[%c0, %c0_0] : memref<8x2xf32, #tpu.memory_space<vmem>>, vector<8x2xf32>
    %c0_1 = arith.constant 0 : index
    %c0_2 = arith.constant 0 : index
    %1 = vector.load %arg2[%c0_1, %c0_2] : memref<2x32xf32, #tpu.memory_space<vmem>>, vector<2x32xf32>
    %cst = arith.constant dense<0.000000e+00> : vector<8x32xf32>
    %2 = tpu.matmul %0, %1, %cst {dimension_numbers = #tpu.dot_dimension_numbers<[1], [0], [0], [1], [0, 0, 1, 1], [], []>} : vector<8x2xf32>, vector<2x32xf32>, vector<8x32xf32> -> vector<8x32xf32>
    %c0_3 = arith.constant 0 : index
    %c0_4 = arith.constant 0 : index
    %3 = vector.load %arg4[%c0_3, %c0_4] : memref<8x32xf32, #tpu.memory_space<vmem>>, vector<8x32xf32>
    tpu.vector_store %arg4[%c0_3, %c0_4], %2 {strides = array<i32>} : memref<8x32xf32, #tpu.memory_space<vmem>>, vector<8x32xf32>,
    %4 = vector.extract_strided_slice %0 {offsets = [0, 0], sizes = [8, 1], strides = [1, 1]} : vector<8x2xf32> to vector<8x1xf32>
    %c0_5 = arith.constant 0 : index
    %c0_6 = arith.constant 0 : index
    %5 = vector.load %arg3[%c0_5, %c0_6] : memref<2x1xf32, #tpu.memory_space<vmem>>, vector<1x1xf32>
    %6 = vector.broadcast %5 : vector<1x1xf32> to vector<8x1xf32>
    %7 = arith.mulf %4, %6 : vector<8x1xf32>
    %8 = vector.extract_strided_slice %0 {offsets = [0, 1], sizes = [8, 1], strides = [1, 1]} : vector<8x2xf32> to vector<8x1xf32>
    %c1 = arith.constant 1 : index
    %c0_7 = arith.constant 0 : index
    %9 = vector.load %arg3[%c1, %c0_7] : memref<2x1xf32, #tpu.memory_space<vmem>>, vector<1x1xf32>
    %10 = vector.broadcast %9 : vector<1x1xf32> to vector<8x1xf32>
    %11 = arith.mulf %8, %10 : vector<8x1xf32>
    %12 = arith.addf %7, %11 : vector<8x1xf32>
    %cst_8 = arith.constant dense<0xFF800000> : vector<1xf32>
    %13 = vector.multi_reduction <maximumf>, %12, %cst_8 [0] : vector<8x1xf32> to vector<1xf32>
    %14 = vector.shape_cast %13 : vector<1xf32> to vector<1x1xf32>
    %15 = vector.broadcast %14 : vector<1x1xf32> to vector<8x1xf32>
    %16 = arith.subf %12, %15 : vector<8x1xf32>
    %17 = math.exp %16 : vector<8x1xf32>
    %cst_9 = arith.constant dense<0.000000e+00> : vector<1xf32>
    %18 = vector.multi_reduction <add>, %17, %cst_9 [0] : vector<8x1xf32> to vector<1xf32>
    %19 = vector.shape_cast %18 : vector<1xf32> to vector<1x1xf32>
    %20 = tpu.reciprocal %19 {approx = true} : vector<1x1xf32> -> vector<1x1xf32>
    %21 = vector.broadcast %20 : vector<1x1xf32> to vector<8x1xf32>
    %22 = arith.mulf %17, %21 : vector<8x1xf32>
    %c0_10 = arith.constant 0 : index
    %c0_11 = arith.constant 0 : index
    %23 = vector.load %arg5[%c0_10, %c0_11] : memref<8x1xf32, #tpu.memory_space<vmem>>, vector<8x1xf32>
    tpu.vector_store %arg5[%c0_10, %c0_11], %22 {strides = array<i32>} : memref<8x1xf32, #tpu.memory_space<vmem>>, vector<8x1xf32>,
    return
  }
  func.func @transform_0(%arg0: i32) -> (i32, i32) {
    %c0_i32 = arith.constant 0 : i32
    %c0_i32_0 = arith.constant 0 : i32
    return %arg0, %c0_i32 : i32, i32
  }
  func.func @transform_1(%arg0: i32) -> (i32, i32) {
    %c0_i32 = arith.constant 0 : i32
    %c0_i32_0 = arith.constant 0 : i32
    %c0_i32_1 = arith.constant 0 : i32
    return %c0_i32, %c0_i32_0 : i32, i32
  }
  func.func @transform_2(%arg0: i32) -> (i32, i32) {
    %c0_i32 = arith.constant 0 : i32
    %c0_i32_0 = arith.constant 0 : i32
    %c0_i32_1 = arith.constant 0 : i32
    return %c0_i32, %c0_i32_0 : i32, i32
  }
  func.func @transform_3(%arg0: i32) -> (i32, i32) {
    %c0_i32 = arith.constant 0 : i32
    %c0_i32_0 = arith.constant 0 : i32
    return %arg0, %c0_i32 : i32, i32
  }
  func.func @transform_4(%arg0: i32) -> (i32, i32) {
    %c0_i32 = arith.constant 0 : i32
    %c0_i32_0 = arith.constant 0 : i32
    return %arg0, %c0_i32 : i32, i32
  }
}

module attributes {stable_mosaic.version = 11 : i64} {
  func.func @_tour_reward_kernel(%arg0: i32, %arg1: memref<2x8xi32, #tpu.memory_space<smem>>, %arg2: memref<8x2xf32, #tpu.memory_space<vmem>>, %arg3: memref<1x1x1xf32, #tpu.memory_space<vmem>>) attributes {dimension_semantics = [#tpu.dimension_semantics<parallel>], iteration_bounds = array<i64: 2>, scalar_prefetch = 1 : i64, scratch_operands = 0 : i64, tpu.core_type = #tpu.core_type<tc>, window_params = [{transform_indices = @transform_0, window_bounds = array<i64: 8, 2>}, {transform_indices = @transform_1, window_bounds = array<i64: 1, 1, 1>}]} {
    %0 = arith.index_cast %arg0 : i32 to index
    %c0 = arith.constant 0 : index
    %1 = memref.load %arg1[%0, %c0] : memref<2x8xi32, #tpu.memory_space<smem>>
    %2 = arith.index_cast %1 : i32 to index
    %c0_0 = arith.constant 0 : index
    %3 = vector.load %arg2[%2, %c0_0] : memref<8x2xf32, #tpu.memory_space<vmem>>, vector<1x2xf32>
    %cst = arith.constant 0.000000e+00 : f32
    %4 = vector.broadcast %cst : f32 to vector<1x1xf32>
    %5 = arith.index_cast %arg0 : i32 to index
    %c1 = arith.constant 1 : index
    %6 = memref.load %arg1[%5, %c1] : memref<2x8xi32, #tpu.memory_space<smem>>
    %7 = arith.index_cast %6 : i32 to index
    %c0_1 = arith.constant 0 : index
    %8 = vector.load %arg2[%7, %c0_1] : memref<8x2xf32, #tpu.memory_space<vmem>>, vector<1x2xf32>
    %9 = arith.subf %3, %8 : vector<1x2xf32>
    %10 = vector.extract_strided_slice %9 {offsets = [0, 0], sizes = [1, 1], strides = [1, 1]} : vector<1x2xf32> to vector<1x1xf32>
    %11 = vector.extract_strided_slice %9 {offsets = [0, 0], sizes = [1, 1], strides = [1, 1]} : vector<1x2xf32> to vector<1x1xf32>
    %12 = arith.mulf %10, %11 : vector<1x1xf32>
    %13 = vector.extract_strided_slice %9 {offsets = [0, 1], sizes = [1, 1], strides = [1, 1]} : vector<1x2xf32> to vector<1x1xf32>
    %14 = vector.extract_strided_slice %9 {offsets = [0, 1], sizes = [1, 1], strides = [1, 1]} : vector<1x2xf32> to vector<1x1xf32>
    %15 = arith.mulf %13, %14 : vector<1x1xf32>
    %16 = arith.addf %12, %15 : vector<1x1xf32>
    %17 = math.sqrt %16 : vector<1x1xf32>
    %18 = arith.addf %4, %17 : vector<1x1xf32>
    %19 = arith.index_cast %arg0 : i32 to index
    %c2 = arith.constant 2 : index
    %20 = memref.load %arg1[%19, %c2] : memref<2x8xi32, #tpu.memory_space<smem>>
    %21 = arith.index_cast %20 : i32 to index
    %c0_2 = arith.constant 0 : index
    %22 = vector.load %arg2[%21, %c0_2] : memref<8x2xf32, #tpu.memory_space<vmem>>, vector<1x2xf32>
    %23 = arith.subf %8, %22 : vector<1x2xf32>
    %24 = vector.extract_strided_slice %23 {offsets = [0, 0], sizes = [1, 1], strides = [1, 1]} : vector<1x2xf32> to vector<1x1xf32>
    %25 = vector.extract_strided_slice %23 {offsets = [0, 0], sizes = [1, 1], strides = [1, 1]} : vector<1x2xf32> to vector<1x1xf32>
    %26 = arith.mulf %24, %25 : vector<1x1xf32>
    %27 = vector.extract_strided_slice %23 {offsets = [0, 1], sizes = [1, 1], strides = [1, 1]} : vector<1x2xf32> to vector<1x1xf32>
    %28 = vector.extract_strided_slice %23 {offsets = [0, 1], sizes = [1, 1], strides = [1, 1]} : vector<1x2xf32> to vector<1x1xf32>
    %29 = arith.mulf %27, %28 : vector<1x1xf32>
    %30 = arith.addf %26, %29 : vector<1x1xf32>
    %31 = math.sqrt %30 : vector<1x1xf32>
    %32 = arith.addf %18, %31 : vector<1x1xf32>
    %33 = arith.index_cast %arg0 : i32 to index
    %c3 = arith.constant 3 : index
    %34 = memref.load %arg1[%33, %c3] : memref<2x8xi32, #tpu.memory_space<smem>>
    %35 = arith.index_cast %34 : i32 to index
    %c0_3 = arith.constant 0 : index
    %36 = vector.load %arg2[%35, %c0_3] : memref<8x2xf32, #tpu.memory_space<vmem>>, vector<1x2xf32>
    %37 = arith.subf %22, %36 : vector<1x2xf32>
    %38 = vector.extract_strided_slice %37 {offsets = [0, 0], sizes = [1, 1], strides = [1, 1]} : vector<1x2xf32> to vector<1x1xf32>
    %39 = vector.extract_strided_slice %37 {offsets = [0, 0], sizes = [1, 1], strides = [1, 1]} : vector<1x2xf32> to vector<1x1xf32>
    %40 = arith.mulf %38, %39 : vector<1x1xf32>
    %41 = vector.extract_strided_slice %37 {offsets = [0, 1], sizes = [1, 1], strides = [1, 1]} : vector<1x2xf32> to vector<1x1xf32>
    %42 = vector.extract_strided_slice %37 {offsets = [0, 1], sizes = [1, 1], strides = [1, 1]} : vector<1x2xf32> to vector<1x1xf32>
    %43 = arith.mulf %41, %42 : vector<1x1xf32>
    %44 = arith.addf %40, %43 : vector<1x1xf32>
    %45 = math.sqrt %44 : vector<1x1xf32>
    %46 = arith.addf %32, %45 : vector<1x1xf32>
    %47 = arith.index_cast %arg0 : i32 to index
    %c4 = arith.constant 4 : index
    %48 = memref.load %arg1[%47, %c4] : memref<2x8xi32, #tpu.memory_space<smem>>
    %49 = arith.index_cast %48 : i32 to index
    %c0_4 = arith.constant 0 : index
    %50 = vector.load %arg2[%49, %c0_4] : memref<8x2xf32, #tpu.memory_space<vmem>>, vector<1x2xf32>
    %51 = arith.subf %36, %50 : vector<1x2xf32>
    %52 = vector.extract_strided_slice %51 {offsets = [0, 0], sizes = [1, 1], strides = [1, 1]} : vector<1x2xf32> to vector<1x1xf32>
    %53 = vector.extract_strided_slice %51 {offsets = [0, 0], sizes = [1, 1], strides = [1, 1]} : vector<1x2xf32> to vector<1x1xf32>
    %54 = arith.mulf %52, %53 : vector<1x1xf32>
    %55 = vector.extract_strided_slice %51 {offsets = [0, 1], sizes = [1, 1], strides = [1, 1]} : vector<1x2xf32> to vector<1x1xf32>
    %56 = vector.extract_strided_slice %51 {offsets = [0, 1], sizes = [1, 1], strides = [1, 1]} : vector<1x2xf32> to vector<1x1xf32>
    %57 = arith.mulf %55, %56 : vector<1x1xf32>
    %58 = arith.addf %54, %57 : vector<1x1xf32>
    %59 = math.sqrt %58 : vector<1x1xf32>
    %60 = arith.addf %46, %59 : vector<1x1xf32>
    %61 = arith.index_cast %arg0 : i32 to index
    %c5 = arith.constant 5 : index
    %62 = memref.load %arg1[%61, %c5] : memref<2x8xi32, #tpu.memory_space<smem>>
    %63 = arith.index_cast %62 : i32 to index
    %c0_5 = arith.constant 0 : index
    %64 = vector.load %arg2[%63, %c0_5] : memref<8x2xf32, #tpu.memory_space<vmem>>, vector<1x2xf32>
    %65 = arith.subf %50, %64 : vector<1x2xf32>
    %66 = vector.extract_strided_slice %65 {offsets = [0, 0], sizes = [1, 1], strides = [1, 1]} : vector<1x2xf32> to vector<1x1xf32>
    %67 = vector.extract_strided_slice %65 {offsets = [0, 0], sizes = [1, 1], strides = [1, 1]} : vector<1x2xf32> to vector<1x1xf32>
    %68 = arith.mulf %66, %67 : vector<1x1xf32>
    %69 = vector.extract_strided_slice %65 {offsets = [0, 1], sizes = [1, 1], strides = [1, 1]} : vector<1x2xf32> to vector<1x1xf32>
    %70 = vector.extract_strided_slice %65 {offsets = [0, 1], sizes = [1, 1], strides = [1, 1]} : vector<1x2xf32> to vector<1x1xf32>
    %71 = arith.mulf %69, %70 : vector<1x1xf32>
    %72 = arith.addf %68, %71 : vector<1x1xf32>
    %73 = math.sqrt %72 : vector<1x1xf32>
    %74 = arith.addf %60, %73 : vector<1x1xf32>
    %75 = arith.index_cast %arg0 : i32 to index
    %c6 = arith.constant 6 : index
    %76 = memref.load %arg1[%75, %c6] : memref<2x8xi32, #tpu.memory_space<smem>>
    %77 = arith.index_cast %76 : i32 to index
    %c0_6 = arith.constant 0 : index
    %78 = vector.load %arg2[%77, %c0_6] : memref<8x2xf32, #tpu.memory_space<vmem>>, vector<1x2xf32>
    %79 = arith.subf %64, %78 : vector<1x2xf32>
    %80 = vector.extract_strided_slice %79 {offsets = [0, 0], sizes = [1, 1], strides = [1, 1]} : vector<1x2xf32> to vector<1x1xf32>
    %81 = vector.extract_strided_slice %79 {offsets = [0, 0], sizes = [1, 1], strides = [1, 1]} : vector<1x2xf32> to vector<1x1xf32>
    %82 = arith.mulf %80, %81 : vector<1x1xf32>
    %83 = vector.extract_strided_slice %79 {offsets = [0, 1], sizes = [1, 1], strides = [1, 1]} : vector<1x2xf32> to vector<1x1xf32>
    %84 = vector.extract_strided_slice %79 {offsets = [0, 1], sizes = [1, 1], strides = [1, 1]} : vector<1x2xf32> to vector<1x1xf32>
    %85 = arith.mulf %83, %84 : vector<1x1xf32>
    %86 = arith.addf %82, %85 : vector<1x1xf32>
    %87 = math.sqrt %86 : vector<1x1xf32>
    %88 = arith.addf %74, %87 : vector<1x1xf32>
    %89 = arith.index_cast %arg0 : i32 to index
    %c7 = arith.constant 7 : index
    %90 = memref.load %arg1[%89, %c7] : memref<2x8xi32, #tpu.memory_space<smem>>
    %91 = arith.index_cast %90 : i32 to index
    %c0_7 = arith.constant 0 : index
    %92 = vector.load %arg2[%91, %c0_7] : memref<8x2xf32, #tpu.memory_space<vmem>>, vector<1x2xf32>
    %93 = arith.subf %78, %92 : vector<1x2xf32>
    %94 = vector.extract_strided_slice %93 {offsets = [0, 0], sizes = [1, 1], strides = [1, 1]} : vector<1x2xf32> to vector<1x1xf32>
    %95 = vector.extract_strided_slice %93 {offsets = [0, 0], sizes = [1, 1], strides = [1, 1]} : vector<1x2xf32> to vector<1x1xf32>
    %96 = arith.mulf %94, %95 : vector<1x1xf32>
    %97 = vector.extract_strided_slice %93 {offsets = [0, 1], sizes = [1, 1], strides = [1, 1]} : vector<1x2xf32> to vector<1x1xf32>
    %98 = vector.extract_strided_slice %93 {offsets = [0, 1], sizes = [1, 1], strides = [1, 1]} : vector<1x2xf32> to vector<1x1xf32>
    %99 = arith.mulf %97, %98 : vector<1x1xf32>
    %100 = arith.addf %96, %99 : vector<1x1xf32>
    %101 = math.sqrt %100 : vector<1x1xf32>
    %102 = arith.addf %88, %101 : vector<1x1xf32>
    %103 = arith.subf %92, %3 : vector<1x2xf32>
    %104 = vector.extract_strided_slice %103 {offsets = [0, 0], sizes = [1, 1], strides = [1, 1]} : vector<1x2xf32> to vector<1x1xf32>
    %105 = vector.extract_strided_slice %103 {offsets = [0, 0], sizes = [1, 1], strides = [1, 1]} : vector<1x2xf32> to vector<1x1xf32>
    %106 = arith.mulf %104, %105 : vector<1x1xf32>
    %107 = vector.extract_strided_slice %103 {offsets = [0, 1], sizes = [1, 1], strides = [1, 1]} : vector<1x2xf32> to vector<1x1xf32>
    %108 = vector.extract_strided_slice %103 {offsets = [0, 1], sizes = [1, 1], strides = [1, 1]} : vector<1x2xf32> to vector<1x1xf32>
    %109 = arith.mulf %107, %108 : vector<1x1xf32>
    %110 = arith.addf %106, %109 : vector<1x1xf32>
    %111 = math.sqrt %110 : vector<1x1xf32>
    %112 = arith.addf %102, %111 : vector<1x1xf32>
    %c0_8 = arith.constant 0 : index
    %c0_9 = arith.constant 0 : index
    %c0_10 = arith.constant 0 : index
    %113 = vector.load %arg3[%c0_8, %c0_9, %c0_10] : memref<1x1x1xf32, #tpu.memory_space<vmem>>, vector<1x1x1xf32>
    %114 = vector.shape_cast %113 : vector<1x1x1xf32> to vector<1x1xf32>
    %115 = vector.shape_cast %112 : vector<1x1xf32> to vector<1x1x1xf32>
    tpu.vector_store %arg3[%c0_8, %c0_9, %c0_10], %115 {strides = array<i32>} : memref<1x1x1xf32, #tpu.memory_space<vmem>>, vector<1x1x1xf32>,
    return
  }
  func.func @transform_0(%arg0: i32, %arg1: memref<2x8xi32, #tpu.memory_space<smem>>) -> (i32, i32) {
    %c0_i32 = arith.constant 0 : i32
    %c0_i32_0 = arith.constant 0 : i32
    return %arg0, %c0_i32 : i32, i32
  }
  func.func @transform_1(%arg0: i32, %arg1: memref<2x8xi32, #tpu.memory_space<smem>>) -> (i32, i32, i32) {
    %c0_i32 = arith.constant 0 : i32
    %c0_i32_0 = arith.constant 0 : i32
    %c0_i32_1 = arith.constant 0 : i32
    return %arg0, %c0_i32, %c0_i32_0 : i32, i32, i32
  }
}

</mosaic_0001>

<bundles_post_ra>
// kernel: neg.1
= control target key start
LH: loop header
LB: loop body
LE: loop exit
PB: predicated region body
PF: predicated region fallthrough
CT: control target
= control target key end

     0   :  { %s24_s0 = inlined_call_operand.vmem [shape: f32[2,8], index: 0, kind: input, shape index: {}]   ;;  %s25_s1 = inlined_call_operand.vmem [shape: f32[2,8], index: 1, kind: output, shape index: {}]  }
   0x1   :  { %v2_v0 = vld [vmem:[%s24_s0] sm:$0xff] }
   0x2   :  { %v5_v1 = vxor.u32 2147483648, %v2_v0 }
   0x4   :  { %7 = vst [vmem:[%s25_s1] sm:$0xff] %v5_v1 }

// kernel: solver_tsne_forward.2
= control target key start
LH: loop header
LB: loop body
LE: loop exit
PB: predicated region body
PF: predicated region fallthrough
CT: control target
= control target key end

     0   :  { %10 = vsyncpa [#allocation3], 0  ;;  %s714_s0 = inlined_call_operand.vmem [shape: f32[16,2], index: 0, kind: input, shape index: {}]   ;;  %s715_s1 = inlined_call_operand.vmem [shape: f32[2,32], index: 1, kind: input, shape index: {}]   ;;  %s716_s2 = inlined_call_operand.vmem [shape: f32[2,1], index: 2, kind: input, shape index: {}]   ;;  %s717_s3 = inlined_call_operand.hbm [shape: f32[16,32], index: 3, kind: output, shape index: {0}]   ;;  %s718_s4 = inlined_call_operand.vmem [shape: f32[16,1], index: 4, kind: output, shape index: {1}]  }
   0x1   :  { %12 = vsyncpa [#allocation3 + $0x1], 0  ;;  %s593_s15 = smov 0   ;;  %s595_s16 = smov 0  }
   0x2   :  { %s597_s17 = smov 0   ;;  %s599_s18 = smov 0  }
   0x3 LB: > { %s614_s19 = sadd.s32 4294967295, %s561_s18   ;;  %s432_s20 = sadd.s32 4294967294, %s561_s18   ;;  %s561_s18 = sphi %s599_s18, %s724_s18   ;;  %s557_s17 = sphi %s597_s17, %s723_s17   ;;  %s553_s16 = sphi %s595_s16, %s722_s16   ;;  %s549_s15 = sphi %s593_s15, %s721_s15  }
   0x4   : > { %s618_s21 = sadd.s32 1, %s561_s18   ;;  %s93_s22 = sadd.s32 1, %s557_s17 }
   0x5   : > { %s90_s23 = ssub.s32 %s561_s18, %s618_s21  ;;  %p103_p0 = scmp.ne.s32.totalorder %s557_s17, %s553_s16 }
   0x6   : > { %p91_p1 = scmp.eq.s32.totalorder %s90_s23, 0  ;;  %p104_p2 = scmp.eq.s32.totalorder %s614_s19, 1 }
   0x7   : > { %p109_p3 = scmp.ne.s32.totalorder %s553_s16, %s549_s15  ;;  %p110_p4 = scmp.eq.s32.totalorder %s432_s20, 1 }
   0x8   : > { %s629_s24 = scalar_select %p91_p1, %s557_s17, %s93_s22  }
   0x9   : > { %p631_p5 = por %p104_p2, %p103_p0  ;;  %p635_p6 = por %p110_p4, %p109_p3 }
   0xa   : > { %p435_p7 = scmp.ge.s32.totalorder %s561_s18, 1  ;;  %p167_p8 = scmp.lt.s32.totalorder %s561_s18, 3 }
   0xc   : > { %p168_p9 = pnand %p435_p7, %p167_p8 }
   0xd   : > { %s563_s5 = smov (!%p168_p9), 1   ;;  %p196_p10 = scmp.lt.s32.totalorder (!%p168_p9), %s614_s19, 1 }
   0xe   : > { %171 = sbr.rel (%p168_p9) target bundleno = 315 (0x13b), region = 32  ;;  %s566_s11 = smov (!%p168_p9), 127  }
   0xf   : > { %s187_s12 = sand.u32 (!%p168_p9), 1, %s553_s16   ;;  %s444_s14 = sshll.u32 (!%p168_p9), %s614_s19, 7 }
  0x10   : > { %s436_s13 = sshll.u32 (!%p168_p9), %s187_s12, 3  ;;  %s662_s28 = scalar_lea.hbm (!%p168_p9), %s717_s3, %s444_s14 }
  0x11   : > { %s189_s20 = scalar_lea.vmem (!%p168_p9), [#allocation2], %s436_s13  ;;  %s329_s29 = scalar_lea.sflag (!%p168_p9), [#allocation3], %s187_s12 }
  0x12   : > { %s346_s22 = sshll.u32 (!%p168_p9), %s189_s20, 4  ;;  %s664_s22 = int_to_ptr.vmem [resolvable:$true] %s346_s22 }
  0x13   : > { %v442_v0 = vld [vmem:[%s716_s2 + $0x1] ss:$0 sm:$0xff]  ;;  %v564_v2 = vmov 0.0   ;;  %vm210_vm0 = vcmask 1041408   ;;  %vm565_vm1 = vmmov 0   ;;  %s649_s6 = scalar_select %p196_p10, %s614_s19, 1 }
  0x14   : > { %v205_v1 = vld [vmem:[%s715_s1] sm:$0x3]  ;;  %298 = vrot.lane.b32.xlu0 %v442_v0, %s563_s5  ;;  %449 = vmatprep.subr.mxu0 %v564_v2  ;;  %vm206_vm2 = vcmask 15360   ;;  %vm284_vm3 = vcmask 261120   ;;  %s501_s30 = scalar_lea.vmem %s664_s22, 128  ;;  %s567_s19 = smov [#allocation2]  }
  0x15   : > { %450 = vmatpush3.msk.msra.mxu0 %vm210_vm0, %v205_v1  ;;  %451 = vmatprep.mubr.msk.f32.mxu0 %vm565_vm1, %v564_v2  ;;  %s437_s7 = sshll.u32 %s649_s6, 3  ;;  %p502_p11 = scmp.ne.s32.totalorder %s664_s22, %s501_s30 }
  0x16   : > { %s199_s10 = scalar_lea.vmem %s714_s0, %s437_s7  ;;  %s505_s5 = sshll.u32 %s567_s19, 4  ;;  %s506_s5 = int_to_ptr.vmem [resolvable:$false] %s505_s5 }
  0x17   : > { %v204_v3 = vld [vmem:[%s199_s10] sm:$0xff]  ;;  %p503_p12 = pnand %p502_p11, %p631_p5  ;;  %s507_s8 = scalar_lea.vmem %s506_s5, 256 }
  0x18   : > { %452 = vmatmul.mubr.msk.f32.vlgmr.msra.gmra.mxu0 %vm206_vm2, %v204_v3  ;;  %p508_p0 = scmp.lt.s32.totalorder %s664_s22, %s506_s5  ;;  %p509_p1 = scmp.lt.s32.totalorder %s507_s8, %s501_s30 }
  0x19   : > { %p504_p13 = pneg %p503_p12 }
  0x1a   : > { %p510_p2 = por %p509_p1, %p508_p0 }
  0x1c   : > { %p511_p3 = pnand %p510_p2, %p504_p13 }
  0x86   : > { %v299_v4 = vpop.permute.xlu0 %298 }
  0x87   : > { %v301_v5 = vmul.f32 %v299_v4, %v204_v3 }
  0x89   : > { %303 = vrot.lane.b32.xlu0 %v301_v5, %s566_s11 }
  0xd8   : > { %v280_v6 = vpop.f32.mrf.mxu0 }
  0xd9   : > { %285 = vst.msk [vmem:[%s189_s20] sm:$0xff] %vm284_vm3, %v280_v6 }
  0xda   : > { %v453_v7 = vpop.f32.mrf.mxu0 }
  0xdb   : > { %514 = shalt.err (!%p511_p3)
}
  0xdc   : > { %s515_s9 = scalar_lea.hbm %s662_s28, 128  ;;  %s519_s12 = scalar_lea.hbm %s717_s3, 256 }
  0xdd   : > { %p516_p4 = scmp.ne.s32.totalorder %s662_s28, %s515_s9  ;;  %p520_p9 = scmp.lt.s32.totalorder %s662_s28, %s717_s3 }
  0xde   : > { %p521_p10 = scmp.lt.s32.totalorder %s519_s12, %s515_s9 }
  0xdf   : > { %p517_p7 = pnand %p516_p4, %p631_p5 }
  0xe0   : > { %p522_p11 = por %p521_p10, %p520_p9 }
  0xe1   : > { %p518_p8 = pneg %p517_p7 }
  0xe3   : > { %p523_p12 = pnand %p522_p11, %p518_p8 }
  0xe5   : > { %526 = shalt.err (!%p523_p12)
}
  0xe6   : > { %454 = dma.vmem_to_hbm [thread:$0]  (%p631_p5), %s664_s22, 128, %s662_s28, %s329_s29   ;;  %v441_v8 = vld [vmem:[%s716_s2] ss:$0 sm:$0xff]  ;;  %vm307_vm4 = vcmask 7168  }
  0xe7   : > { %v291_v9 = vmul.f32 %v441_v8, %v204_v3  ;;  %s203_s27 = scalar_lea.vmem %s718_s4, %s437_s7 }
  0xfb   : > { %v304_v10 = vpop.permute.xlu0 %303 }
  0xfc   : > { %v306_v11 = vadd.f32 %v304_v10, %v291_v9 }
  0xfe   : > { %v308_v12 = vsel %vm307_vm4, %v306_v11, -inf }
  0xff   : > { %v309_v13 = vrot.slane %v308_v12, 4 }
 0x101   : > { %v310_v14 = vmax.f32 %v308_v12, %v309_v13 }
 0x103   : > { %v311_v15 = vrot.slane %v310_v14, 2 }
 0x105   : > { %v312_v16 = vmax.f32 %v310_v14, %v311_v15 }
 0x107   : > { %v313_v17 = vrot.slane %v312_v16, 1 }
 0x109   : > { %v314_v18 = vmax.f32 %v312_v16, %v313_v17 }
 0x10b   : > { %v315_v19 = vsub.f32 %v306_v11, %v314_v18 }
 0x10d   : > { %v316_v20 = vmul.f32 1.442695, %v315_v19 }
 0x10f   : > { %497 = vpow2.f32 %v316_v20 }
 0x11c   : > { %v498_v21 = vpop.eup %497 }
 0x11d   : > { %v318_v22 = vsel %vm307_vm4, %v498_v21, 0.0 }
 0x11e   : > { %v319_v23 = vrot.slane %v318_v22, 4 }
 0x120   : > { %v320_v24 = vadd.f32 %v319_v23, %v318_v22 }
 0x122   : > { %v321_v25 = vrot.slane %v320_v24, 2 }
 0x124   : > { %v322_v26 = vadd.f32 %v321_v25, %v320_v24 }
 0x126   : > { %v323_v27 = vrot.slane %v322_v26, 1 }
 0x128   : > { %v324_v28 = vadd.f32 %v323_v27, %v322_v26 }
 0x12a   : > { %499 = vrcp.f32 %v324_v28 }
 0x137   : > { %v500_v29 = vpop.eup %499 }
 0x138   : > { %v326_v30 = vmul.f32 %v500_v29, %v498_v21 }
 0x13a   : > { %327 = vst.msk [vmem:[%s203_s27] sm:$0xff] %vm307_vm4, %v326_v30 }
 0x13b PF: > { %p460_p5 = scmp.ge.s32.totalorder %s561_s18, 2  ;;  %s361_s28 = sand.u32 1, %s549_s15  }
 0x13c   : > { %s362_s29 = scalar_lea.sflag [#allocation3], %s361_s28 }
 0x13d   : > { %p457_p13 = pnand %p460_p5, %p635_p6 }
 0x13f   : > { %p458_p0 = pneg %p457_p13 }
 0x141   : > { %544 = dma.done.wait (%p458_p0), %s362_s29, 128  }
 0x142   : > { %546 = vsyncadd (%p458_p0), %s362_s29, 4294967168  ;;  %p15_p1 = scmp.ge.s32.totalorder %s618_s21, 4   ;;  %s721_s15 = smov %s553_s16 }
 0x143   : > { %s722_s16 = smov %s557_s17  ;;  %s723_s17 = smov %s629_s24 }
 0x144   : > { %s724_s18 = smov %s618_s21  ;;  %17 = sbr.rel (!%p15_p1) target bundleno = 3 (0x3), region = 79 }
 0x149   :  { %374 = vsyncpa [#allocation3], 1 }
 0x14a   :  { %376 = vsyncpa [#allocation3 + $0x1], 1 }

// kernel: solver_tsne_forward.3
= control target key start
LH: loop header
LB: loop body
LE: loop exit
PB: predicated region body
PF: predicated region fallthrough
CT: control target
= control target key end

     0   :  { %s451_s0 = inlined_call_operand.vmem [shape: s32[2,8], index: 0, kind: input, shape index: {}]   ;;  %s452_s1 = inlined_call_operand.vmem [shape: f32[16,2], index: 1, kind: input, shape index: {}]   ;;  %s453_s2 = inlined_call_operand.vmem [shape: f32[2,1,1], index: 2, kind: output, shape index: {}]  }
   0x1   :  { %s7_s11 = sshll.u32 %s451_s0, 4  ;;  %s8_s11 = int_to_ptr.vmem [resolvable:$true] %s7_s11 }
   0x2   :  { %s361_s12 = scalar_lea.vmem %s8_s11, 32  ;;  %p366_p1 = scmp.lt.s32.totalorder %s8_s11, %s8_s11 }
   0x3   :  { %p362_p0 = scmp.ne.s32.totalorder %s8_s11, %s361_s12  ;;  %p367_p2 = scmp.lt.s32.totalorder %s361_s12, %s361_s12 }
   0x5   :  { %p368_p3 = por %p367_p2, %p366_p1 }
   0x7   :  { %p369_p4 = pnand %p368_p3, %p362_p0 }
   0x9   :  { %372 = shalt.err (!%p369_p4)  }
   0xa   :  { %s383_s13 = smov [#allocation3]  }
   0xb   :  { %10 = dma.vmem_to_smem %s8_s11, 32, %s383_s13, [#allocation2] }
   0xc   :  { %377 = dma.done.wait [#allocation2], 32 }
   0xd   :  { %378 = vsyncadd [#allocation2], 4294967264 }
   0xe   :  { %12 = sfence }
   0xf   :  { %s403_s14 = smov 0  }
  0x10 LB: > { %s326_s0 = sadd.s32 4294967295, %s381_s14   ;;  %p330_p5 = scmp.ge.s32.totalorder %s381_s14, 1  ;;  %s381_s14 = sphi %s403_s14, %s18_s14  }
  0x11   : > { %p93_p6 = scmp.lt.s32.totalorder %s381_s14, 3 }
  0x13   : > { %p94_p7 = pnand %p330_p5, %p93_p6 }
  0x14   : > { %p110_p8 = scmp.lt.s32.totalorder (!%p94_p7), %s326_s0, 1  ;;  %s332_s15 = sshll.u32 (!%p94_p7), %s326_s0, 7 }
  0x15   : > { %97 = sbr.rel (%p94_p7) target bundleno = 193 (0xc1), region = 24  ;;  %s140_s16 = sadd.s32 (!%p94_p7), 2, %s332_s15 }
  0x16   : > { %s141_s17 = sld [smem:[#allocation3 + %s140_s16]] (!%p94_p7)  ;;  %s159_s18 = sadd.s32 (!%p94_p7), 3, %s332_s15 }
  0x17   : > { %s160_s23 = sld [smem:[#allocation3 + %s159_s18]] (!%p94_p7)  ;;  %s178_s24 = sadd.s32 (!%p94_p7), 4, %s332_s15 }
  0x18   : > { %s118_s25 = sld [smem:[#allocation3 + %s332_s15]] (!%p94_p7)  ;;  %s121_s27 = sadd.s32 (!%p94_p7), 1, %s332_s15 }
  0x19   : > { %s179_s26 = sld [smem:[#allocation3 + %s178_s24]] (!%p94_p7)  ;;  %s235_s29 = sadd.s32 (!%p94_p7), 7, %s332_s15 }
  0x1a   : > { %s455_s0 = smov (!%p110_p8, %s326_s0), 1  ;;  %s122_s28 = sld [smem:[#allocation3 + %s121_s27]] }
  0x1b   : > { %s331_s19 = sshll.u32 %s455_s0, 3  ;;  %s236_s3 = sld [smem:[#allocation3 + %s235_s29]] }
  0x1c   : > { %s417_s22 = scalar_lea.vmem %s452_s1, %s331_s19  ;;  %s197_s4 = sadd.s32 5, %s332_s15 }
  0x1d   : > { %s142_s30 = scalar_lea.vmem %s417_s22, %s141_s17  ;;  %s216_s5 = sadd.s32 6, %s332_s15 }
  0x1e   : > { %v143_v0 = vld [vmem:[%s142_s30] sm:$0x1]  ;;  %s161_s6 = scalar_lea.vmem %s417_s22, %s160_s23  ;;  %s198_s7 = sld [smem:[#allocation3 + %s197_s4]] }
  0x1f   : > { %v162_v1 = vld [vmem:[%s161_s6] sm:$0x1]  ;;  %s119_s8 = scalar_lea.vmem %s417_s22, %s118_s25  ;;  %s217_s9 = sld [smem:[#allocation3 + %s216_s5]] }
  0x20   : > { %v163_v2 = vsub.f32 %v143_v0, %v162_v1  ;;  %s180_s10 = scalar_lea.vmem %s417_s22, %s179_s26  ;;  %v120_v3 = vld [vmem:[%s119_s8] sm:$0x1]  ;;  %s123_s11 = scalar_lea.vmem %s417_s22, %s122_s28 }
  0x21   : > { %v181_v4 = vld [vmem:[%s180_s10] sm:$0x1]  ;;  %s237_s12 = scalar_lea.vmem %s417_s22, %s236_s3  ;;  %s384_s13 = smov 127  }
  0x22   : > { %v164_v5 = vmul.f32 %v163_v2, %v163_v2  ;;  %v182_v6 = vsub.f32 %v162_v1, %v181_v4  ;;  %v124_v7 = vld [vmem:[%s123_s11] sm:$0x1]  ;;  %s116_s19 = scalar_lea.vmem %s453_s2, %s455_s0 }
  0x23   : > { %v125_v8 = vsub.f32 %v120_v3, %v124_v7  ;;  %v144_v9 = vsub.f32 %v124_v7, %v143_v0  ;;  %v238_v12 = vld [vmem:[%s237_s12] sm:$0x1] }
  0x24   : > { %166 = vrot.lane.b32.xlu1 %v164_v5, %s384_s13  ;;  %v183_v10 = vmul.f32 %v182_v6, %v182_v6  ;;  %s199_s15 = scalar_lea.vmem %s417_s22, %s198_s7  ;;  %v254_v18 = vsub.f32 %v238_v12, %v120_v3 }
  0x25   : > { %v126_v11 = vmul.f32 %v125_v8, %v125_v8  ;;  %v200_v13 = vld [vmem:[%s199_s15] sm:$0x1]  ;;  %s218_s16 = scalar_lea.vmem %s417_s22, %s217_s9  ;;  %v145_v15 = vmul.f32 %v144_v9, %v144_v9 }
  0x26   : > { %v219_v14 = vld [vmem:[%s218_s16] sm:$0x1]  ;;  %v201_v17 = vsub.f32 %v181_v4, %v200_v13  ;;  %v255_v22 = vmul.f32 %v254_v18, %v254_v18 }
  0x27   : > { %128 = vrot.lane.b32.xlu0 %v126_v11, %s384_s13  ;;  %v220_v16 = vsub.f32 %v200_v13, %v219_v14  ;;  %v239_v21 = vsub.f32 %v219_v14, %v238_v12 }
  0x28   : > { %185 = vrot.lane.b32.xlu1 %v183_v10, %s384_s13  ;;  %v202_v20 = vmul.f32 %v201_v17, %v201_v17 }
  0x29   : > { %v221_v19 = vmul.f32 %v220_v16, %v220_v16  ;;  %v240_v23 = vmul.f32 %v239_v21, %v239_v21 }
  0x2b   : > { %147 = vrot.lane.b32.xlu0 %v145_v15, %s384_s13 }
  0x2c   : > { %223 = vrot.lane.b32.xlu1 %v221_v19, %s384_s13 }
  0x2f   : > { %204 = vrot.lane.b32.xlu0 %v202_v20, %s384_s13 }
  0x30   : > { %257 = vrot.lane.b32.xlu1 %v255_v22, %s384_s13 }
  0x33   : > { %242 = vrot.lane.b32.xlu0 %v240_v23, %s384_s13 }
  0x96   : > { %v167_v24 = vpop.permute.xlu1 %166 }
  0x97   : > { %v169_v25 = vadd.f32 %v167_v24, %v164_v5 }
  0x99   : > { %v129_v26 = vpop.permute.xlu0 %128  ;;  %345 = vrsqrt.f32 %v169_v25  ;;  %vm172_vm1 = vcmp.eq.f32.partialorder %v169_v25, inf  ;;  %vm174_vm2 = vcmp.eq.f32.partialorder %v169_v25, 0.0  ;;  %v175_v55 = vand.u32 2147483648, %v169_v25 }
  0x9a   : > { %v131_v27 = vadd.f32 %v129_v26, %v126_v11  ;;  %v186_v28 = vpop.permute.xlu1 %185 }
  0x9b   : > { %v188_v29 = vadd.f32 %v186_v28, %v183_v10 }
  0x9c   : > { %347 = vrsqrt.f32 %v131_v27  ;;  %vm134_vm0 = vcmp.eq.f32.partialorder %v131_v27, inf  ;;  %v137_v50 = vand.u32 2147483648, %v131_v27  ;;  %vm136_vm4 = vcmp.eq.f32.partialorder %v131_v27, 0.0 }
  0x9d   : > { %v148_v30 = vpop.permute.xlu0 %147  ;;  %349 = vrsqrt.f32 %v188_v29  ;;  %vm191_vm6 = vcmp.eq.f32.partialorder %v188_v29, inf  ;;  %v194_v0 = vand.u32 2147483648, %v188_v29  ;;  %vm193_vm8 = vcmp.eq.f32.partialorder %v188_v29, 0.0 }
  0x9e   : > { %v150_v31 = vadd.f32 %v148_v30, %v145_v15  ;;  %v224_v32 = vpop.permute.xlu1 %223 }
  0x9f   : > { %v427_v33 = vadd.f32 %v224_v32, %v221_v19 }
  0xa0   : > { %351 = vrsqrt.f32 %v150_v31  ;;  %vm153_vm3 = vcmp.eq.f32.partialorder %v150_v31, inf  ;;  %v156_v51 = vand.u32 2147483648, %v150_v31  ;;  %vm155_vm5 = vcmp.eq.f32.partialorder %v150_v31, 0.0 }
  0xa1   : > { %v205_v34 = vpop.permute.xlu0 %204  ;;  %353 = vrsqrt.f32 %v427_v33  ;;  %vm229_vm9 = vcmp.eq.f32.partialorder %v427_v33, inf  ;;  %v232_v10 = vand.u32 2147483648, %v427_v33  ;;  %vm231_vm12 = vcmp.eq.f32.partialorder %v427_v33, 0.0 }
  0xa2   : > { %v207_v35 = vadd.f32 %v205_v34, %v202_v20  ;;  %v258_v36 = vpop.permute.xlu1 %257 }
  0xa3   : > { %v430_v37 = vadd.f32 %v258_v36, %v255_v22 }
  0xa4   : > { %355 = vrsqrt.f32 %v207_v35  ;;  %vm210_vm7 = vcmp.eq.f32.partialorder %v207_v35, inf  ;;  %vm212_vm10 = vcmp.eq.f32.partialorder %v207_v35, 0.0  ;;  %v213_v5 = vand.u32 2147483648, %v207_v35 }
  0xa5   : > { %v243_v38 = vpop.permute.xlu0 %242  ;;  %357 = vrsqrt.f32 %v430_v37  ;;  %vm263_vm13 = vcmp.eq.f32.partialorder %v430_v37, inf  ;;  %v266_v18 = vand.u32 2147483648, %v430_v37  ;;  %vm265_vm15 = vcmp.eq.f32.partialorder %v430_v37, 0.0 }
  0xa6   : > { %v245_v39 = vadd.f32 %v243_v38, %v240_v23  ;;  %v346_v40 = vpop.eup %345 }
  0xa7   : > { %v171_v44 = vmul.f32 %v346_v40, %v169_v25 }
  0xa8   : > { %359 = vrsqrt.f32 %v245_v39  ;;  %vm248_vm11 = vcmp.eq.f32.partialorder %v245_v39, inf  ;;  %v251_v15 = vand.u32 2147483648, %v245_v39  ;;  %vm250_vm14 = vcmp.eq.f32.partialorder %v245_v39, 0.0 }
  0xa9   : > { %v348_v41 = vpop.eup %347  ;;  %v173_v52 = vsel %vm172_vm1, %v169_v25, %v171_v44 }
  0xaa   : > { %v133_v42 = vmul.f32 %v348_v41, %v131_v27  ;;  %v350_v43 = vpop.eup %349  ;;  %v176_v63 = vsel %vm174_vm2, %v175_v55, %v173_v52 }
  0xab   : > { %v190_v47 = vmul.f32 %v350_v43, %v188_v29 }
  0xac   : > { %v135_v46 = vsel %vm134_vm0, %v131_v27, %v133_v42  ;;  %vm269_vm0 = vcmask 0  }
  0xad   : > { %v352_v45 = vpop.eup %351  ;;  %v138_v56 = vsel %vm136_vm4, %v137_v50, %v135_v46  ;;  %v192_v58 = vsel %vm191_vm6, %v188_v29, %v190_v47 }
  0xae   : > { %v152_v48 = vmul.f32 %v352_v45, %v150_v31  ;;  %v354_v49 = vpop.eup %353  ;;  %v195_v4 = vsel %vm193_vm8, %v194_v0, %v192_v58 }
  0xaf   : > { %v228_v60 = vmul.f32 %v354_v49, %v427_v33 }
  0xb0   : > { %v154_v53 = vsel %vm153_vm3, %v150_v31, %v152_v48 }
  0xb1   : > { %v356_v54 = vpop.eup %355  ;;  %v157_v57 = vsel %vm155_vm5, %v156_v51, %v154_v53  ;;  %v230_v6 = vsel %vm229_vm9, %v427_v33, %v228_v60 }
  0xb2   : > { %v158_v59 = vadd.f32 %v157_v57, %v138_v56  ;;  %v209_v61 = vmul.f32 %v356_v54, %v207_v35  ;;  %v358_v62 = vpop.eup %357  ;;  %v233_v14 = vsel %vm231_vm12, %v232_v10, %v230_v6 }
  0xb3   : > { %v262_v8 = vmul.f32 %v358_v62, %v430_v37 }
  0xb4   : > { %v177_v1 = vadd.f32 %v176_v63, %v158_v59  ;;  %v211_v2 = vsel %vm210_vm7, %v207_v35, %v209_v61 }
  0xb5   : > { %v360_v3 = vpop.eup %359  ;;  %v214_v11 = vsel %vm212_vm10, %v213_v5, %v211_v2  ;;  %v264_v16 = vsel %vm263_vm13, %v430_v37, %v262_v8 }
  0xb6   : > { %v196_v7 = vadd.f32 %v195_v4, %v177_v1  ;;  %v247_v9 = vmul.f32 %v360_v3, %v245_v39  ;;  %v267_v21 = vsel %vm265_vm15, %v266_v18, %v264_v16 }
  0xb8   : > { %v215_v12 = vadd.f32 %v214_v11, %v196_v7  ;;  %v249_v13 = vsel %vm248_vm11, %v245_v39, %v247_v9 }
  0xb9   : > { %v252_v19 = vsel %vm250_vm14, %v251_v15, %v249_v13 }
  0xba   : > { %v234_v17 = vadd.f32 %v233_v14, %v215_v12 }
  0xbc   : > { %v253_v20 = vadd.f32 %v252_v19, %v234_v17 }
  0xbe   : > { %v268_v22 = vadd.f32 %v267_v21, %v253_v20 }
  0xc0   : > { %270 = vst.msk [vmem:[%s116_s19] sm:$0x1] %vm269_vm0, %v268_v22 }
  0xc1 PF: > { %s18_s14 = sadd.s32 1, %s381_s14  }
  0xc2   : > { %p15_p9 = scmp.ge.s32.totalorder %s18_s14, 4  }
  0xc4   :  { %17 = sbr.rel (!%p15_p9) target bundleno = 16 (0x10), region = 62 }

</bundles_post_ra>
